<compile_context>
chip_gen: v7x
topology: tpu7x:2x2x1
jax: 0.10.0
libtpu: 0.0.40
codegen_flags: <defaults>
</compile_context>

<pallas_src>
import jax
import jax.numpy as jnp
from jax.experimental import pallas as pl
from jax.experimental.pallas import tpu as pltpu

# Same architecture as the PyTorch script.
LAYERS = [2] + [20] * 6 + [10] + [5] + [1]
N_LINEAR = len(LAYERS) - 1           # 9 linear layers
PARAM_SUBLANES = 32                  # >= max fan_out (20), multiple of 8
PARAM_LANES = 128                    # >= max fan_in (20) + bias column
BIAS_COL = PARAM_LANES - 1           # bias lives in the last lane column
VPU_MAX_K = 10                       # contractions with K <= 10 skip the MXU


def mlp_kernel(p_ref, x_ref, o_ref):
    """Full MLP forward for one lane-block of rows.

    p_ref : (N_LINEAR, 32, 128) packed parameter slab (W^T + bias column)
    x_ref : (2, block_n)        input coordinates, features x rows
    o_ref : (1, block_n)        output, lane-dense
    """
    h = x_ref[...]                                        # (2, block_n) f32
    for i in range(N_LINEAR):
        fan_in, fan_out = LAYERS[i], LAYERS[i + 1]
        w_t = p_ref[i, 0:fan_out, 0:fan_in]               # (out, in)
        b = p_ref[i, 0:fan_out, BIAS_COL:BIAS_COL + 1]    # (out, 1)
        if fan_in <= VPU_MAX_K:
            # Tiny contraction: VPU broadcast multiply-adds, keep the MXU free.
            acc = w_t[:, 0:1] * h[0:1, :]
            for k in range(1, fan_in):
                acc = acc + w_t[:, k:k + 1] * h[k:k + 1, :]
            h = acc + b
        else:
            # 20-wide contractions on the MXU with f32 accumulation.
            h = jnp.dot(w_t, h, preferred_element_type=jnp.float32) + b
        if i < N_LINEAR - 1:
            h = jnp.tanh(h)                               # EUP slot, overlaps free
    o_ref[...] = h                                        # (1, block_n) store


def pack_params(params):
    """Pack all layer weights/biases into one (N_LINEAR, 32, 128) f32 slab."""
    slab = jnp.zeros((N_LINEAR, PARAM_SUBLANES, PARAM_LANES), jnp.float32)
    for i, (w, b) in enumerate(params):
        fan_in, fan_out = w.shape
        slab = slab.at[i, :fan_out, :fan_in].set(w.T.astype(jnp.float32))
        slab = slab.at[i, :fan_out, BIAS_COL].set(b.reshape(-1).astype(jnp.float32))
    return slab


def dnn_forward(x, params, *, block_n=128):
    """Run the [2,20,...,1] MLP on x of shape (N, 2) with a Pallas kernel."""
    n, in_dim = x.shape
    assert in_dim == LAYERS[0]
    out_dim = LAYERS[-1]

    # Pad the batch to a multiple of the lane block (ragged N handled here).
    n_pad = -(-n // block_n) * block_n
    xt = jnp.zeros((in_dim, n_pad), jnp.float32).at[:, :n].set(
        x.T.astype(jnp.float32))

    slab = pack_params(params)
    grid = (n_pad // block_n,)

    out_t = pl.pallas_call(
        mlp_kernel,
        out_shape=jax.ShapeDtypeStruct((out_dim, n_pad), jnp.float32),
        grid_spec=pltpu.PrefetchScalarGridSpec(
            num_scalar_prefetch=0,
            grid=grid,
            in_specs=[
                # Single parameter slab, same block every grid step (no re-DMA).
                pl.BlockSpec((N_LINEAR, PARAM_SUBLANES, PARAM_LANES),
                             lambda i: (0, 0, 0)),
                # Inputs: features x rows, rows on the lane dimension.
                pl.BlockSpec((in_dim, block_n), lambda i: (0, i)),
            ],
            out_specs=pl.BlockSpec((out_dim, block_n), lambda i: (0, i)),
        ),
        compiler_params=pltpu.CompilerParams(
            dimension_semantics=("parallel",)),
    )(slab, xt)

    return out_t[:, :n].T                                 # (N, 1)


def init_params(key):
    """Deterministic init mirroring torch.nn.Linear default (uniform +-1/sqrt(fan_in))."""
    params = []
    for i in range(N_LINEAR):
        fan_in, fan_out = LAYERS[i], LAYERS[i + 1]
        key, kw, kb = jax.random.split(key, 3)
        bound = 1.0 / jnp.sqrt(jnp.float32(fan_in))
        w = jax.random.uniform(kw, (fan_in, fan_out), jnp.float32, -bound, bound)
        b = jax.random.uniform(kb, (1, fan_out), jnp.float32, -bound, bound)
        params.append((w, b))
    return params


def dnn_reference(x, params):
    """Plain-JAX reference of the same forward pass (for sanity checking)."""
    h = x
    for i, (w, b) in enumerate(params):
        h = h @ w + b
        if i < len(params) - 1:
            h = jnp.tanh(h)
    return h


if __name__ == "__main__":
    key = jax.random.PRNGKey(0)
    key, kx = jax.random.split(key)

    # N points with 2 coordinates (x, y) in the PINN domain [-d/2, d/2]=[-2.5, 2.5].
    N = 256
    x = jax.random.uniform(kx, (N, 2), jnp.float32, -2.5, 2.5)

    params = init_params(key)

    out = dnn_forward(x, params, block_n=128)
    out = jax.block_until_ready(out)

    ref = dnn_reference(x, params)
    assert out.shape == (N, 1)
    assert jnp.allclose(out, ref, atol=1e-5, rtol=1e-5), "mismatch vs reference"

    print("KERNEL_OK")
</pallas_src>

<mosaic_0001>
module attributes {stable_mosaic.version = 11 : i64} {
  func.func @mlp_kernel(%arg0: i32, %arg1: memref<9x32x128xf32, #tpu.memory_space<vmem>>, %arg2: memref<2x128xf32, #tpu.memory_space<vmem>>, %arg3: memref<1x128xf32, #tpu.memory_space<vmem>>) attributes {dimension_semantics = [#tpu.dimension_semantics<parallel>], iteration_bounds = array<i64: 2>, scalar_prefetch = 0 : i64, scratch_operands = 0 : i64, tpu.core_type = #tpu.core_type<tc>, window_params = [{pipeline_mode = #tpu.pipeline_mode<synchronous>, transform_indices = @transform_0, window_bounds = array<i64: 9, 32, 128>}, {transform_indices = @transform_1, window_bounds = array<i64: 2, 128>}, {transform_indices = @transform_2, window_bounds = array<i64: 1, 128>}]} {
    %c0 = arith.constant 0 : index
    %c0_0 = arith.constant 0 : index
    %0 = vector.load %arg2[%c0, %c0_0] : memref<2x128xf32, #tpu.memory_space<vmem>>, vector<2x128xf32>
    %c0_1 = arith.constant 0 : index
    %c0_2 = arith.constant 0 : index
    %c0_3 = arith.constant 0 : index
    %1 = vector.load %arg1[%c0_1, %c0_2, %c0_3] : memref<9x32x128xf32, #tpu.memory_space<vmem>>, vector<1x20x2xf32>
    %2 = vector.shape_cast %1 : vector<1x20x2xf32> to vector<20x2xf32>
    %c0_4 = arith.constant 0 : index
    %c0_5 = arith.constant 0 : index
    %c127 = arith.constant 127 : index
    %3 = vector.load %arg1[%c0_4, %c0_5, %c127] : memref<9x32x128xf32, #tpu.memory_space<vmem>>, vector<1x20x1xf32>
    %4 = vector.shape_cast %3 : vector<1x20x1xf32> to vector<20x1xf32>
    %5 = vector.extract_strided_slice %2 {offsets = [0, 0], sizes = [20, 1], strides = [1, 1]} : vector<20x2xf32> to vector<20x1xf32>
    %6 = vector.extract_strided_slice %0 {offsets = [0, 0], sizes = [1, 128], strides = [1, 1]} : vector<2x128xf32> to vector<1x128xf32>
    %7 = vector.broadcast %5 : vector<20x1xf32> to vector<20x128xf32>
    %8 = vector.broadcast %6 : vector<1x128xf32> to vector<20x128xf32>
    %9 = arith.mulf %7, %8 : vector<20x128xf32>
    %10 = vector.extract_strided_slice %2 {offsets = [0, 1], sizes = [20, 1], strides = [1, 1]} : vector<20x2xf32> to vector<20x1xf32>
    %11 = vector.extract_strided_slice %0 {offsets = [1, 0], sizes = [1, 128], strides = [1, 1]} : vector<2x128xf32> to vector<1x128xf32>
    %12 = vector.broadcast %10 : vector<20x1xf32> to vector<20x128xf32>
    %13 = vector.broadcast %11 : vector<1x128xf32> to vector<20x128xf32>
    %14 = arith.mulf %12, %13 : vector<20x128xf32>
    %15 = arith.addf %9, %14 : vector<20x128xf32>
    %16 = vector.broadcast %4 : vector<20x1xf32> to vector<20x128xf32>
    %17 = arith.addf %15, %16 : vector<20x128xf32>
    %18 = math.tanh %17 : vector<20x128xf32>
    %c1 = arith.constant 1 : index
    %c0_6 = arith.constant 0 : index
    %c0_7 = arith.constant 0 : index
    %19 = vector.load %arg1[%c1, %c0_6, %c0_7] : memref<9x32x128xf32, #tpu.memory_space<vmem>>, vector<1x20x20xf32>
    %20 = vector.shape_cast %19 : vector<1x20x20xf32> to vector<20x20xf32>
    %c1_8 = arith.constant 1 : index
    %c0_9 = arith.constant 0 : index
    %c127_10 = arith.constant 127 : index
    %21 = vector.load %arg1[%c1_8, %c0_9, %c127_10] : memref<9x32x128xf32, #tpu.memory_space<vmem>>, vector<1x20x1xf32>
    %22 = vector.shape_cast %21 : vector<1x20x1xf32> to vector<20x1xf32>
    %cst = arith.constant dense<0.000000e+00> : vector<20x128xf32>
    %23 = tpu.matmul %20, %18, %cst {dimension_numbers = #tpu.dot_dimension_numbers<[1], [0], [0], [1], [0, 0, 1, 1], [], []>} : vector<20x20xf32>, vector<20x128xf32>, vector<20x128xf32> -> vector<20x128xf32>
    %24 = vector.broadcast %22 : vector<20x1xf32> to vector<20x128xf32>
    %25 = arith.addf %23, %24 : vector<20x128xf32>
    %26 = math.tanh %25 : vector<20x128xf32>
    %c2 = arith.constant 2 : index
    %c0_11 = arith.constant 0 : index
    %c0_12 = arith.constant 0 : index
    %27 = vector.load %arg1[%c2, %c0_11, %c0_12] : memref<9x32x128xf32, #tpu.memory_space<vmem>>, vector<1x20x20xf32>
    %28 = vector.shape_cast %27 : vector<1x20x20xf32> to vector<20x20xf32>
    %c2_13 = arith.constant 2 : index
    %c0_14 = arith.constant 0 : index
    %c127_15 = arith.constant 127 : index
    %29 = vector.load %arg1[%c2_13, %c0_14, %c127_15] : memref<9x32x128xf32, #tpu.memory_space<vmem>>, vector<1x20x1xf32>
    %30 = vector.shape_cast %29 : vector<1x20x1xf32> to vector<20x1xf32>
    %cst_16 = arith.constant dense<0.000000e+00> : vector<20x128xf32>
    %31 = tpu.matmul %28, %26, %cst_16 {dimension_numbers = #tpu.dot_dimension_numbers<[1], [0], [0], [1], [0, 0, 1, 1], [], []>} : vector<20x20xf32>, vector<20x128xf32>, vector<20x128xf32> -> vector<20x128xf32>
    %32 = vector.broadcast %30 : vector<20x1xf32> to vector<20x128xf32>
    %33 = arith.addf %31, %32 : vector<20x128xf32>
    %34 = math.tanh %33 : vector<20x128xf32>
    %c3 = arith.constant 3 : index
    %c0_17 = arith.constant 0 : index
    %c0_18 = arith.constant 0 : index
    %35 = vector.load %arg1[%c3, %c0_17, %c0_18] : memref<9x32x128xf32, #tpu.memory_space<vmem>>, vector<1x20x20xf32>
    %36 = vector.shape_cast %35 : vector<1x20x20xf32> to vector<20x20xf32>
    %c3_19 = arith.constant 3 : index
    %c0_20 = arith.constant 0 : index
    %c127_21 = arith.constant 127 : index
    %37 = vector.load %arg1[%c3_19, %c0_20, %c127_21] : memref<9x32x128xf32, #tpu.memory_space<vmem>>, vector<1x20x1xf32>
    %38 = vector.shape_cast %37 : vector<1x20x1xf32> to vector<20x1xf32>
    %cst_22 = arith.constant dense<0.000000e+00> : vector<20x128xf32>
    %39 = tpu.matmul %36, %34, %cst_22 {dimension_numbers = #tpu.dot_dimension_numbers<[1], [0], [0], [1], [0, 0, 1, 1], [], []>} : vector<20x20xf32>, vector<20x128xf32>, vector<20x128xf32> -> vector<20x128xf32>
    %40 = vector.broadcast %38 : vector<20x1xf32> to vector<20x128xf32>
    %41 = arith.addf %39, %40 : vector<20x128xf32>
    %42 = math.tanh %41 : vector<20x128xf32>
    %c4 = arith.constant 4 : index
    %c0_23 = arith.constant 0 : index
    %c0_24 = arith.constant 0 : index
    %43 = vector.load %arg1[%c4, %c0_23, %c0_24] : memref<9x32x128xf32, #tpu.memory_space<vmem>>, vector<1x20x20xf32>
    %44 = vector.shape_cast %43 : vector<1x20x20xf32> to vector<20x20xf32>
    %c4_25 = arith.constant 4 : index
    %c0_26 = arith.constant 0 : index
    %c127_27 = arith.constant 127 : index
    %45 = vector.load %arg1[%c4_25, %c0_26, %c127_27] : memref<9x32x128xf32, #tpu.memory_space<vmem>>, vector<1x20x1xf32>
    %46 = vector.shape_cast %45 : vector<1x20x1xf32> to vector<20x1xf32>
    %cst_28 = arith.constant dense<0.000000e+00> : vector<20x128xf32>
    %47 = tpu.matmul %44, %42, %cst_28 {dimension_numbers = #tpu.dot_dimension_numbers<[1], [0], [0], [1], [0, 0, 1, 1], [], []>} : vector<20x20xf32>, vector<20x128xf32>, vector<20x128xf32> -> vector<20x128xf32>
    %48 = vector.broadcast %46 : vector<20x1xf32> to vector<20x128xf32>
    %49 = arith.addf %47, %48 : vector<20x128xf32>
    %50 = math.tanh %49 : vector<20x128xf32>
    %c5 = arith.constant 5 : index
    %c0_29 = arith.constant 0 : index
    %c0_30 = arith.constant 0 : index
    %51 = vector.load %arg1[%c5, %c0_29, %c0_30] : memref<9x32x128xf32, #tpu.memory_space<vmem>>, vector<1x20x20xf32>
    %52 = vector.shape_cast %51 : vector<1x20x20xf32> to vector<20x20xf32>
    %c5_31 = arith.constant 5 : index
    %c0_32 = arith.constant 0 : index
    %c127_33 = arith.constant 127 : index
    %53 = vector.load %arg1[%c5_31, %c0_32, %c127_33] : memref<9x32x128xf32, #tpu.memory_space<vmem>>, vector<1x20x1xf32>
    %54 = vector.shape_cast %53 : vector<1x20x1xf32> to vector<20x1xf32>
    %cst_34 = arith.constant dense<0.000000e+00> : vector<20x128xf32>
    %55 = tpu.matmul %52, %50, %cst_34 {dimension_numbers = #tpu.dot_dimension_numbers<[1], [0], [0], [1], [0, 0, 1, 1], [], []>} : vector<20x20xf32>, vector<20x128xf32>, vector<20x128xf32> -> vector<20x128xf32>
    %56 = vector.broadcast %54 : vector<20x1xf32> to vector<20x128xf32>
    %57 = arith.addf %55, %56 : vector<20x128xf32>
    %58 = math.tanh %57 : vector<20x128xf32>
    %c6 = arith.constant 6 : index
    %c0_35 = arith.constant 0 : index
    %c0_36 = arith.constant 0 : index
    %59 = vector.load %arg1[%c6, %c0_35, %c0_36] : memref<9x32x128xf32, #tpu.memory_space<vmem>>, vector<1x10x20xf32>
    %60 = vector.shape_cast %59 : vector<1x10x20xf32> to vector<10x20xf32>
    %c6_37 = arith.constant 6 : index
    %c0_38 = arith.constant 0 : index
    %c127_39 = arith.constant 127 : index
    %61 = vector.load %arg1[%c6_37, %c0_38, %c127_39] : memref<9x32x128xf32, #tpu.memory_space<vmem>>, vector<1x10x1xf32>
    %62 = vector.shape_cast %61 : vector<1x10x1xf32> to vector<10x1xf32>
    %cst_40 = arith.constant dense<0.000000e+00> : vector<10x128xf32>
    %63 = tpu.matmul %60, %58, %cst_40 {dimension_numbers = #tpu.dot_dimension_numbers<[1], [0], [0], [1], [0, 0, 1, 1], [], []>} : vector<10x20xf32>, vector<20x128xf32>, vector<10x128xf32> -> vector<10x128xf32>
    %64 = vector.broadcast %62 : vector<10x1xf32> to vector<10x128xf32>
    %65 = arith.addf %63, %64 : vector<10x128xf32>
    %66 = math.tanh %65 : vector<10x128xf32>
    %c7 = arith.constant 7 : index
    %c0_41 = arith.constant 0 : index
    %c0_42 = arith.constant 0 : index
    %67 = vector.load %arg1[%c7, %c0_41, %c0_42] : memref<9x32x128xf32, #tpu.memory_space<vmem>>, vector<1x5x10xf32>
    %68 = vector.shape_cast %67 : vector<1x5x10xf32> to vector<5x10xf32>
    %c7_43 = arith.constant 7 : index
    %c0_44 = arith.constant 0 : index
    %c127_45 = arith.constant 127 : index
    %69 = vector.load %arg1[%c7_43, %c0_44, %c127_45] : memref<9x32x128xf32, #tpu.memory_space<vmem>>, vector<1x5x1xf32>
    %70 = vector.shape_cast %69 : vector<1x5x1xf32> to vector<5x1xf32>
    %71 = vector.extract_strided_slice %68 {offsets = [0, 0], sizes = [5, 1], strides = [1, 1]} : vector<5x10xf32> to vector<5x1xf32>
    %72 = vector.extract_strided_slice %66 {offsets = [0, 0], sizes = [1, 128], strides = [1, 1]} : vector<10x128xf32> to vector<1x128xf32>
    %73 = vector.broadcast %71 : vector<5x1xf32> to vector<5x128xf32>
    %74 = vector.broadcast %72 : vector<1x128xf32> to vector<5x128xf32>
    %75 = arith.mulf %73, %74 : vector<5x128xf32>
    %76 = vector.extract_strided_slice %68 {offsets = [0, 1], sizes = [5, 1], strides = [1, 1]} : vector<5x10xf32> to vector<5x1xf32>
    %77 = vector.extract_strided_slice %66 {offsets = [1, 0], sizes = [1, 128], strides = [1, 1]} : vector<10x128xf32> to vector<1x128xf32>
    %78 = vector.broadcast %76 : vector<5x1xf32> to vector<5x128xf32>
    %79 = vector.broadcast %77 : vector<1x128xf32> to vector<5x128xf32>
    %80 = arith.mulf %78, %79 : vector<5x128xf32>
    %81 = arith.addf %75, %80 : vector<5x128xf32>
    %82 = vector.extract_strided_slice %68 {offsets = [0, 2], sizes = [5, 1], strides = [1, 1]} : vector<5x10xf32> to vector<5x1xf32>
    %83 = vector.extract_strided_slice %66 {offsets = [2, 0], sizes = [1, 128], strides = [1, 1]} : vector<10x128xf32> to vector<1x128xf32>
    %84 = vector.broadcast %82 : vector<5x1xf32> to vector<5x128xf32>
    %85 = vector.broadcast %83 : vector<1x128xf32> to vector<5x128xf32>
    %86 = arith.mulf %84, %85 : vector<5x128xf32>
    %87 = arith.addf %81, %86 : vector<5x128xf32>
    %88 = vector.extract_strided_slice %68 {offsets = [0, 3], sizes = [5, 1], strides = [1, 1]} : vector<5x10xf32> to vector<5x1xf32>
    %89 = vector.extract_strided_slice %66 {offsets = [3, 0], sizes = [1, 128], strides = [1, 1]} : vector<10x128xf32> to vector<1x128xf32>
    %90 = vector.broadcast %88 : vector<5x1xf32> to vector<5x128xf32>
    %91 = vector.broadcast %89 : vector<1x128xf32> to vector<5x128xf32>
    %92 = arith.mulf %90, %91 : vector<5x128xf32>
    %93 = arith.addf %87, %92 : vector<5x128xf32>
    %94 = vector.extract_strided_slice %68 {offsets = [0, 4], sizes = [5, 1], strides = [1, 1]} : vector<5x10xf32> to vector<5x1xf32>
    %95 = vector.extract_strided_slice %66 {offsets = [4, 0], sizes = [1, 128], strides = [1, 1]} : vector<10x128xf32> to vector<1x128xf32>
    %96 = vector.broadcast %94 : vector<5x1xf32> to vector<5x128xf32>
    %97 = vector.broadcast %95 : vector<1x128xf32> to vector<5x128xf32>
    %98 = arith.mulf %96, %97 : vector<5x128xf32>
    %99 = arith.addf %93, %98 : vector<5x128xf32>
    %100 = vector.extract_strided_slice %68 {offsets = [0, 5], sizes = [5, 1], strides = [1, 1]} : vector<5x10xf32> to vector<5x1xf32>
    %101 = vector.extract_strided_slice %66 {offsets = [5, 0], sizes = [1, 128], strides = [1, 1]} : vector<10x128xf32> to vector<1x128xf32>
    %102 = vector.broadcast %100 : vector<5x1xf32> to vector<5x128xf32>
    %103 = vector.broadcast %101 : vector<1x128xf32> to vector<5x128xf32>
    %104 = arith.mulf %102, %103 : vector<5x128xf32>
    %105 = arith.addf %99, %104 : vector<5x128xf32>
    %106 = vector.extract_strided_slice %68 {offsets = [0, 6], sizes = [5, 1], strides = [1, 1]} : vector<5x10xf32> to vector<5x1xf32>
    %107 = vector.extract_strided_slice %66 {offsets = [6, 0], sizes = [1, 128], strides = [1, 1]} : vector<10x128xf32> to vector<1x128xf32>
    %108 = vector.broadcast %106 : vector<5x1xf32> to vector<5x128xf32>
    %109 = vector.broadcast %107 : vector<1x128xf32> to vector<5x128xf32>
    %110 = arith.mulf %108, %109 : vector<5x128xf32>
    %111 = arith.addf %105, %110 : vector<5x128xf32>
    %112 = vector.extract_strided_slice %68 {offsets = [0, 7], sizes = [5, 1], strides = [1, 1]} : vector<5x10xf32> to vector<5x1xf32>
    %113 = vector.extract_strided_slice %66 {offsets = [7, 0], sizes = [1, 128], strides = [1, 1]} : vector<10x128xf32> to vector<1x128xf32>
    %114 = vector.broadcast %112 : vector<5x1xf32> to vector<5x128xf32>
    %115 = vector.broadcast %113 : vector<1x128xf32> to vector<5x128xf32>
    %116 = arith.mulf %114, %115 : vector<5x128xf32>
    %117 = arith.addf %111, %116 : vector<5x128xf32>
    %118 = vector.extract_strided_slice %68 {offsets = [0, 8], sizes = [5, 1], strides = [1, 1]} : vector<5x10xf32> to vector<5x1xf32>
    %119 = vector.extract_strided_slice %66 {offsets = [8, 0], sizes = [1, 128], strides = [1, 1]} : vector<10x128xf32> to vector<1x128xf32>
    %120 = vector.broadcast %118 : vector<5x1xf32> to vector<5x128xf32>
    %121 = vector.broadcast %119 : vector<1x128xf32> to vector<5x128xf32>
    %122 = arith.mulf %120, %121 : vector<5x128xf32>
    %123 = arith.addf %117, %122 : vector<5x128xf32>
    %124 = vector.extract_strided_slice %68 {offsets = [0, 9], sizes = [5, 1], strides = [1, 1]} : vector<5x10xf32> to vector<5x1xf32>
    %125 = vector.extract_strided_slice %66 {offsets = [9, 0], sizes = [1, 128], strides = [1, 1]} : vector<10x128xf32> to vector<1x128xf32>
    %126 = vector.broadcast %124 : vector<5x1xf32> to vector<5x128xf32>
    %127 = vector.broadcast %125 : vector<1x128xf32> to vector<5x128xf32>
    %128 = arith.mulf %126, %127 : vector<5x128xf32>
    %129 = arith.addf %123, %128 : vector<5x128xf32>
    %130 = vector.broadcast %70 : vector<5x1xf32> to vector<5x128xf32>
    %131 = arith.addf %129, %130 : vector<5x128xf32>
    %132 = math.tanh %131 : vector<5x128xf32>
    %c8 = arith.constant 8 : index
    %c0_46 = arith.constant 0 : index
    %c0_47 = arith.constant 0 : index
    %133 = vector.load %arg1[%c8, %c0_46, %c0_47] : memref<9x32x128xf32, #tpu.memory_space<vmem>>, vector<1x1x5xf32>
    %134 = vector.shape_cast %133 : vector<1x1x5xf32> to vector<1x5xf32>
    %c8_48 = arith.constant 8 : index
    %c0_49 = arith.constant 0 : index
    %c127_50 = arith.constant 127 : index
    %135 = vector.load %arg1[%c8_48, %c0_49, %c127_50] : memref<9x32x128xf32, #tpu.memory_space<vmem>>, vector<1x1x1xf32>
    %136 = vector.shape_cast %135 : vector<1x1x1xf32> to vector<1x1xf32>
    %137 = vector.extract_strided_slice %134 {offsets = [0, 0], sizes = [1, 1], strides = [1, 1]} : vector<1x5xf32> to vector<1x1xf32>
    %138 = vector.extract_strided_slice %132 {offsets = [0, 0], sizes = [1, 128], strides = [1, 1]} : vector<5x128xf32> to vector<1x128xf32>
    %139 = vector.broadcast %137 : vector<1x1xf32> to vector<1x128xf32>
    %140 = arith.mulf %139, %138 : vector<1x128xf32>
    %141 = vector.extract_strided_slice %134 {offsets = [0, 1], sizes = [1, 1], strides = [1, 1]} : vector<1x5xf32> to vector<1x1xf32>
    %142 = vector.extract_strided_slice %132 {offsets = [1, 0], sizes = [1, 128], strides = [1, 1]} : vector<5x128xf32> to vector<1x128xf32>
    %143 = vector.broadcast %141 : vector<1x1xf32> to vector<1x128xf32>
    %144 = arith.mulf %143, %142 : vector<1x128xf32>
    %145 = arith.addf %140, %144 : vector<1x128xf32>
    %146 = vector.extract_strided_slice %134 {offsets = [0, 2], sizes = [1, 1], strides = [1, 1]} : vector<1x5xf32> to vector<1x1xf32>
    %147 = vector.extract_strided_slice %132 {offsets = [2, 0], sizes = [1, 128], strides = [1, 1]} : vector<5x128xf32> to vector<1x128xf32>
    %148 = vector.broadcast %146 : vector<1x1xf32> to vector<1x128xf32>
    %149 = arith.mulf %148, %147 : vector<1x128xf32>
    %150 = arith.addf %145, %149 : vector<1x128xf32>
    %151 = vector.extract_strided_slice %134 {offsets = [0, 3], sizes = [1, 1], strides = [1, 1]} : vector<1x5xf32> to vector<1x1xf32>
    %152 = vector.extract_strided_slice %132 {offsets = [3, 0], sizes = [1, 128], strides = [1, 1]} : vector<5x128xf32> to vector<1x128xf32>
    %153 = vector.broadcast %151 : vector<1x1xf32> to vector<1x128xf32>
    %154 = arith.mulf %153, %152 : vector<1x128xf32>
    %155 = arith.addf %150, %154 : vector<1x128xf32>
    %156 = vector.extract_strided_slice %134 {offsets = [0, 4], sizes = [1, 1], strides = [1, 1]} : vector<1x5xf32> to vector<1x1xf32>
    %157 = vector.extract_strided_slice %132 {offsets = [4, 0], sizes = [1, 128], strides = [1, 1]} : vector<5x128xf32> to vector<1x128xf32>
    %158 = vector.broadcast %156 : vector<1x1xf32> to vector<1x128xf32>
    %159 = arith.mulf %158, %157 : vector<1x128xf32>
    %160 = arith.addf %155, %159 : vector<1x128xf32>
    %161 = vector.broadcast %136 : vector<1x1xf32> to vector<1x128xf32>
    %162 = arith.addf %160, %161 : vector<1x128xf32>
    %c0_51 = arith.constant 0 : index
    %c0_52 = arith.constant 0 : index
    %163 = vector.load %arg3[%c0_51, %c0_52] : memref<1x128xf32, #tpu.memory_space<vmem>>, vector<1x128xf32>
    tpu.vector_store %arg3[%c0_51, %c0_52], %162 {strides = array<i32>} : memref<1x128xf32, #tpu.memory_space<vmem>>, vector<1x128xf32>,
    return
  }
  func.func @transform_0(%arg0: i32) -> (i32, i32, i32) {
    %c0_i32 = arith.constant 0 : i32
    %c0_i32_0 = arith.constant 0 : i32
    %c0_i32_1 = arith.constant 0 : i32
    %c0_i32_2 = arith.constant 0 : i32
    return %c0_i32, %c0_i32_0, %c0_i32_1 : i32, i32, i32
  }
  func.func @transform_1(%arg0: i32) -> (i32, i32) {
    %c0_i32 = arith.constant 0 : i32
    %c0_i32_0 = arith.constant 0 : i32
    return %c0_i32, %arg0 : i32, i32
  }
  func.func @transform_2(%arg0: i32) -> (i32, i32) {
    %c0_i32 = arith.constant 0 : i32
    %c0_i32_0 = arith.constant 0 : i32
    return %c0_i32, %arg0 : i32, i32
  }
}

</mosaic_0001>

<bundles_post_ra>
// kernel: tpu_custom_call.1
= control target key start
LH: loop header
LB: loop body
LE: loop exit
PB: predicated region body
PF: predicated region fallthrough
CT: control target
= control target key end

     0   :  { %7 = vsyncpa [#allocation3], 0  ;;  %s1989_s0 = inlined_call_operand.hbm [shape: f32[9,32,128], index: 0, kind: input, shape index: {}]   ;;  %s1990_s1 = inlined_call_operand.hbm [shape: f32[2,256], index: 1, kind: input, shape index: {}]   ;;  %s1991_s2 = inlined_call_operand.hbm [shape: f32[1,256], index: 2, kind: output, shape index: {}]  }
   0x1   :  { %8 = vsyncpa [#allocation6], 0 }
   0x2   :  { %10 = vsyncpa [#allocation6 + $0x1], 0 }
   0x3   :  { %11 = vsyncpa [#allocation4], 0 }
   0x4   :  { %13 = vsyncpa [#allocation4 + $0x1], 0  ;;  %s1620_s9 = smov 0   ;;  %s1622_s10 = smov 0  }
   0x5   :  { %s1624_s11 = smov 0   ;;  %s1626_s12 = smov 0  }
   0x6 LB: > { %s1641_s13 = sadd.s32 4294967295, %s1584_s12   ;;  %s1139_s14 = sadd.s32 4294967294, %s1584_s12   ;;  %s1584_s12 = sphi %s1626_s12, %s2011_s12   ;;  %s1580_s11 = sphi %s1624_s11, %s2010_s11   ;;  %s1576_s10 = sphi %s1622_s10, %s2009_s10   ;;  %s1572_s9 = sphi %s1620_s9, %s2008_s9  }
   0x7   : > { %p60_p0 = scmp.ne.s32.totalorder %s1576_s10, %s1572_s9  ;;  %p1992_p1 = scmp.eq.s32.totalorder %s1641_s13, 0 }
   0x8   : > { %p90_p3 = scmp.eq.s32.totalorder %s1139_s14, 1  ;;  %p1140_p5 = scmp.ge.s32.totalorder %s1584_s12, 1 }
   0x9   : > { %p1650_p4 = por %p1992_p1, %p60_p0  ;;  %p97_p7 = scmp.lt.s32.totalorder %s1584_s12, 3 }
   0xa   : > { %p1655_p6 = por %p90_p3, %p60_p0  ;;  %s1586_s18 = smov [#allocation2]  }
   0xb   : > { %s1995_s15 = scalar_select %p1650_p4, 1, 0 }
   0xc   : > { %s1996_s16 = scalar_select %p1655_p6, 1, 0 }
   0xd   : > { %p1660_p8 = pnand %p1140_p5, %p97_p7  ;;  %s109_s19 = sshll.u32 %s1586_s18, 4  ;;  %s1664_s19 = int_to_ptr.vmem [resolvable:$true] %s109_s19 }
   0xe   : > { %s1676_s21 = sadd.s32 1, %s1584_s12   ;;  %s47_s22 = sadd.s32 1, %s1580_s11 }
   0xf   : > { %s1997_s17 = scalar_select %p1660_p8, 1, 0 }
  0x10   : > { %p1324_p9 = pneg %p1660_p8  ;;  %s44_s23 = ssub.s32 %s1584_s12, %s1676_s21 }
  0x11   : > { %s1456_s26 = scalar_lea.hbm %s1989_s0, 4608 }
  0x12   : > { %p1671_p11 = pnand %p1324_p9, %p1992_p1  ;;  %p1457_p12 = scmp.ne.s32.totalorder %s1989_s0, %s1456_s26 }
  0x13   : > { %p1463_p5 = scmp.lt.u32.totalorder %s1456_s26, %s1989_s0 }
  0x14   : > { %p1458_p13 = pneg %p1671_p11 }
  0x16   : > { %p1459_p0 = pnand %p1458_p13, %p1457_p12 }
  0x18   : > { %p1460_p3 = pneg %p1459_p0 }
  0x1a   : > { %p1465_p7 = pnand %p1463_p5, %p1460_p3 }
  0x1c   : > { %1468 = shalt.err (!%p1465_p7)
}
  0x1d   : > { %s1469_s3 = scalar_lea.vmem %s1664_s19, 4608  ;;  %p1477_p2 = scmp.lt.s32.totalorder %s1664_s19, %s1664_s19 }
  0x1e   : > { %p1470_p9 = scmp.ne.s32.totalorder %s1664_s19, %s1469_s3  ;;  %p1478_p6 = scmp.lt.s32.totalorder %s1469_s3, %s1469_s3 }
  0x20   : > { %p1472_p10 = pnand %p1470_p9, %p1458_p13  ;;  %p1479_p4 = por %p1478_p6, %p1477_p2 }
  0x22   : > { %p1473_p1 = pneg %p1472_p10 }
  0x24   : > { %p1480_p8 = pnand %p1479_p4, %p1473_p1 }
  0x26   : > { %1483 = shalt.err (!%p1480_p8)
}
  0x27   : > { %s1587_s4 = smov 128   ;;  %s1588_s5 = smov 8  }
  0x28   : > { %1327 = dma.hbm_to_vmem [thread:$0]  (!%p1671_p11), %s1989_s0, 4608, %s1664_s19, [#allocation3], %s1587_s4, %s1587_s4, %s1588_s5  }
  0x29   : > { %p45_p2 = scmp.eq.s32.totalorder %s44_s23, 0  ;;  %p54_p1 = scmp.ne.s32.totalorder %s1580_s11, %s1576_s10 }
  0x2a   : > { %p55_p4 = scmp.eq.s32.totalorder %s1584_s12, 0  ;;  %p1337_p6 = scmp.lt.s32.totalorder %s1584_s12, 2 }
  0x2b   : > { %s1707_s8 = scalar_select %p45_p2, %s1580_s11, %s47_s22  }
  0x2c   : > { %p56_p8 = por %p55_p4, %p54_p1  ;;  %p1999_p10 = scmp.eq.s32.totalorder %s1641_s13, 1 }
  0x2d   : > { %s123_s18 = sand.u32 1, %s1580_s11   ;;  %s1144_s24 = sshll.u32 %s1584_s12, 5 }
  0x2e   : > { %p1711_p12 = por %p1999_p10, %p54_p1  ;;  %s1143_s25 = sshll.u32 %s123_s18, 1 }
  0x2f   : > { %s1720_s27 = scalar_lea.hbm %s1990_s1, %s1144_s24  ;;  %s127_s19 = scalar_lea.vmem [#allocation5], %s1143_s25 }
  0x30   : > { %s134_s22 = sshll.u32 %s127_s19, 4  ;;  %p1722_p11 = pnand %p1337_p6, %p56_p8  ;;  %s1726_s22 = int_to_ptr.vmem [resolvable:$true] %s134_s22 }
  0x31   : > { %s124_s28 = scalar_lea.sflag [#allocation6], %s123_s18  ;;  %s1484_s29 = scalar_lea.hbm %s1720_s27, 32 }
  0x32   : > { %p1485_p13 = scmp.ne.s32.totalorder %s1720_s27, %s1484_s29  ;;  %p1486_p0 = pneg %p1722_p11 }
  0x33   : > { %s1489_s4 = scalar_lea.hbm %s1990_s1, 64  ;;  %p1490_p7 = scmp.lt.u32.totalorder %s1720_s27, %s1990_s1 }
  0x34   : > { %p1487_p3 = pnand %p1486_p0, %p1485_p13  ;;  %p1491_p9 = scmp.lt.u32.totalorder %s1489_s4, %s1484_s29 }
  0x35   : > { %p1493_p1 = scmp.lt.u32.totalorder %s1484_s29, %s1720_s27 }
  0x36   : > { %p1488_p5 = pneg %p1487_p3  ;;  %p1492_p2 = por %p1491_p9, %p1490_p7 }
  0x38   : > { %p1494_p4 = por %p1493_p1, %p1492_p2 }
  0x3a   : > { %p1495_p6 = pnand %p1494_p4, %p1488_p5 }
  0x3c   : > { %1498 = shalt.err (!%p1495_p6)
}
  0x3d   : > { %s1499_s7 = scalar_lea.vmem %s1726_s22, 32  ;;  %s1589_s18 = smov [#allocation5]  }
  0x3e   : > { %p1500_p8 = scmp.ne.s32.totalorder %s1726_s22, %s1499_s7  ;;  %s1504_s24 = sshll.u32 %s1589_s18, 4  ;;  %s1505_s24 = int_to_ptr.vmem [resolvable:$false] %s1504_s24 }
  0x3f   : > { %s1506_s25 = scalar_lea.vmem %s1505_s24, 64  ;;  %p1507_p3 = scmp.lt.s32.totalorder %s1726_s22, %s1505_s24 }
  0x40   : > { %p1502_p10 = pnand %p1500_p8, %p1486_p0  ;;  %p1508_p7 = scmp.lt.s32.totalorder %s1506_s25, %s1499_s7 }
  0x42   : > { %p1503_p13 = pneg %p1502_p10  ;;  %p1509_p9 = por %p1508_p7, %p1507_p3 }
  0x44   : > { %p1510_p2 = pnand %p1509_p9, %p1503_p13 }
  0x46   : > { %1513 = shalt.err (!%p1510_p2)
}
  0x47   : > { %1331 = dma.hbm_to_vmem [thread:$0]  (!%p1722_p11), %s1720_s27, 32, %s1726_s22, %s124_s28  }
  0x48   : > { %p2002_p5 = scmp.ne.s32.totalorder %s1997_s17, 0 }
  0x49   : > { %p2003_p0 = scmp.eq.s32.totalorder (!%p2002_p5), %s1641_s13, 0 }
  0x4a   : > { %143 = sbr.rel (%p2002_p5) target bundleno = 1719 (0x6b7), region = 28 }
  0x51   : > { %1559 = dma.done.wait (%p2003_p0), [#allocation3], 4608   ;;  %p2004_p1 = pmov %p2003_p0 }
  0x52   : > { %s1760_s20 = sand.u32 1, %s1576_s10   ;;  %p2005_p11 = scmp.ne.s32.totalorder %s1995_s15, 0 }
  0x53   : > { %1561 = vsyncadd (%p2004_p1), [#allocation3], 4294962688  ;;  %s1147_s26 = sshll.u32 %s1760_s20, 1  ;;  %s150_s19 = scalar_lea.sflag [#allocation6], %s1760_s20 }
  0x54   : > { %s1764_s23 = scalar_lea.vmem [#allocation5], %s1147_s26 }
  0x55   : > { %1563 = dma.done.wait (%p2005_p11), %s150_s19, 32  }
  0x56   : > { %1565 = vsyncadd (%p2005_p11), %s150_s19, 4294967264  ;;  %v1590_v0 = vmov 1   ;;  %v1591_v1 = vmov 0   ;;  %v174_v2 = vld [vmem:[#allocation2] sm:$0xff]  ;;  %v175_v3 = vld [vmem:[#allocation2 + $0x8] sm:$0xff]  ;;  %v1592_v4 = vmov 127   ;;  %v192_v25 = vlaneseq }
  0x57   : > { %1390 = vset.pattern.permute.xlu1 %v1590_v0  ;;  %1389 = vset.pattern.permute.xlu0 %v1591_v1  ;;  %v176_v5 = vld [vmem:[#allocation2 + $0x10] sm:$0xf]  ;;  %v1778_v6 = vld [vmem:[#allocation2 + $0x20] sm:$0xff]  ;;  %v1593_v7 = vmov 0.0|0.0   ;;  %vm1594_vm0 = vmmov 0   ;;  %v1595_v11 = vmov 0.0  }
  0x58   : > { %200 = vperm.xlu1 %1390, %v174_v2   ;;  %179 = vperm.xlu0 %1389, %v174_v2   ;;  %v1782_v8 = vld [vmem:[#allocation2 + $0x30] sm:$0xf]  ;;  %v1786_v9 = vld [vmem:[#allocation2 + $0x40] sm:$0xff]  ;;  %v1795_v12 = vld [vmem:[#allocation2 + $0x28] sm:$0xff]  ;;  %v1837_v26 = vshrl.u32 %v192_v25, 7  ;;  %vm265_vm1 = vcmask 1043456  }
  0x59   : > { %1293 = vmatprep.subr.bf16.mxu0 %v1593_v7  ;;  %1312 = vmatprep.subr.bf16.mxu1 %v1593_v7  ;;  %v1789_v10 = vld [vmem:[#allocation2 + $0x50] sm:$0xf]  ;;  %v1799_v13 = vld [vmem:[#allocation2 + $0x68] sm:$0xff]  ;;  %v1802_v14 = vld [vmem:[#allocation2 + $0x80] sm:$0xff]  ;;  %vm258_vm2 = vcmask 162816   ;;  %s1171_s15 = sshll.u32 %s1641_s13, 4 }
  0x5a   : > { %1215 = vmatprep.mubr.msk.f32.mxu0 %vm1594_vm0, %v1595_v11  ;;  %1221 = vmatprep.mubr.msk.f32.mxu1 %vm1594_vm0, %v1595_v11  ;;  %v1805_v15 = vld [vmem:[#allocation2 + $0x90] sm:$0xf]  ;;  %v1808_v16 = vld [vmem:[#allocation2 + $0xa8] sm:$0xff]  ;;  %v1811_v17 = vld [vmem:[#allocation2 + $0xc0] sm:$0xff]  ;;  %v1840_v27 = vsub.s32 1, %v1837_v26  ;;  %v1843_v28 = vsub.s32 0, %v1837_v26  ;;  %s1945_s29 = scalar_lea.hbm %s1991_s2, %s1171_s15 }
  0x5b   : > { %v1813_v18 = vld [vmem:[#allocation2 + $0x48] sm:$0xff]  ;;  %v1817_v19 = vld [vmem:[#allocation2 + $0x60] sm:$0xff]  ;;  %v1821_v20 = vld [vmem:[#allocation2 + $0x70] sm:$0xf]  ;;  %s172_s17 = scalar_lea.vmem [#allocation7], %s1760_s20  ;;  %s1049_s30 = scalar_lea.sflag [#allocation4], %s1760_s20 }
  0x5c   : > { %204 = vperm.xlu1 %1390, %v175_v3   ;;  %184 = vperm.xlu0 %1389, %v175_v3   ;;  %v1824_v21 = vld [vmem:[#allocation2 + $0x88] sm:$0xff]  ;;  %v1827_v22 = vld [vmem:[#allocation2 + $0xa0] sm:$0xff]  ;;  %v1830_v23 = vld [vmem:[#allocation2 + $0xb0] sm:$0xf]  ;;  %s1061_s27 = sshll.u32 %s172_s17, 4  ;;  %s1604_s13 = smov [#allocation7]   ;;  %s1947_s27 = int_to_ptr.vmem [resolvable:$true] %s1061_s27 }
  0x5d   : > { %v1833_v24 = vld [vmem:[#allocation2 + $0xc8] sm:$0x3]  ;;  %v173_v29 = vld [vmem:[%s1764_s23] sm:$0x3]  ;;  %s1514_s3 = scalar_lea.vmem %s1947_s27, 16  ;;  %s1518_s4 = sshll.u32 %s1604_s13, 4  ;;  %s1519_s4 = int_to_ptr.vmem [resolvable:$false] %s1518_s4 }
  0x5e   : > { %v214_v31 = vrot.slane %v173_v29, %v1840_v27  ;;  %v195_v33 = vrot.slane %v173_v29, %v1843_v28  ;;  %p1515_p4 = scmp.ne.s32.totalorder %s1947_s27, %s1514_s3  ;;  %s1520_s5 = scalar_lea.vmem %s1519_s4, 32 }
  0x5f   : > { %p1521_p10 = scmp.lt.s32.totalorder %s1947_s27, %s1519_s4  ;;  %p1522_p13 = scmp.lt.s32.totalorder %s1520_s5, %s1514_s3 }
  0x60   : > { %1392 = vset.pattern.permute.xlu1 %v1592_v4  ;;  %1391 = vset.pattern.permute.xlu0 %v1592_v4  ;;  %p1516_p6 = pnand %p1515_p4, %p1711_p12 }
  0x61   : > { %226 = vperm.xlu1 %1392, %v175_v3   ;;  %222 = vperm.xlu0 %1391, %v174_v2   ;;  %p1523_p3 = por %p1522_p13, %p1521_p10 }
  0x62   : > { %p1517_p8 = pneg %p1516_p6 }
  0x64   : > { %p1524_p7 = pnand %p1523_p3, %p1517_p8 }
  0x65   : > { %1393 = vset.pattern.permute.xlu1 %v1591_v1  ;;  %1394 = vset.pattern.permute.xlu0 %v1590_v0 }
  0x66   : > { %189 = vperm.xlu1 %1393, %v176_v5   ;;  %208 = vperm.xlu0 %1394, %v176_v5  }
  0x6a   : > { %1395 = vset.pattern.permute.xlu1 %v1592_v4  ;;  %1396 = vset.pattern.permute.xlu0 %v1592_v4 }
  0x6b   : > { %230 = vperm.xlu1 %1395, %v176_v5   ;;  %250 = vperm.xlu0 %1396, %v1795_v12  }
  0x6f   : > { %245 = vperm.xlu1 %1395, %v1778_v6   ;;  %363 = vperm.xlu0 %1396, %v1813_v18  }
  0x73   : > { %255 = vperm.xlu1 %1395, %v1782_v8   ;;  %469 = vperm.xlu0 %1396, %v1817_v19  }
  0x77   : > { %358 = vperm.xlu1 %1395, %v1786_v9   ;;  %479 = vperm.xlu0 %1396, %v1821_v20  }
  0x7b   : > { %368 = vperm.xlu1 %1395, %v1789_v10   ;;  %585 = vperm.xlu0 %1396, %v1824_v21  }
  0x7f   : > { %474 = vperm.xlu1 %1395, %v1799_v13   ;;  %691 = vperm.xlu0 %1396, %v1827_v22  }
  0x83   : > { %580 = vperm.xlu1 %1395, %v1802_v14   ;;  %701 = vperm.xlu0 %1396, %v1830_v23  }
  0x87   : > { %590 = vperm.xlu1 %1395, %v1805_v15   ;;  %806 = vperm.xlu0 %1396, %v1833_v24  }
  0x8b   : > { %696 = vperm.xlu1 %1395, %v1808_v16   ;;  %1398 = vset.pattern.permute.xlu0 %v1590_v0 }
  0x8f   : > { %801 = vperm.xlu1 %1395, %v1811_v17  }
  0x93   : > { %1397 = vset.pattern.permute.xlu1 %v1591_v1 }
  0xd7   : > { %v201_v30 = vpop.permute.xlu1 %200  ;;  %v180_v32 = vpop.permute.xlu0 %179 }
  0xd8   : > { %v215_v34 = vmul.f32 %v214_v31, %v201_v30  ;;  %v196_v35 = vmul.f32 %v195_v33, %v180_v32 }
  0xda   : > { %v218_v41 = vadd.f32 %v215_v34, %v196_v35 }
  0xdb   : > { %v205_v36 = vpop.permute.xlu1 %204  ;;  %v185_v37 = vpop.permute.xlu0 %184 }
  0xdc   : > { %v216_v38 = vmul.f32 %v214_v31, %v205_v36  ;;  %v197_v39 = vmul.f32 %v195_v33, %v185_v37 }
  0xde   : > { %v219_v40 = vadd.f32 %v216_v38, %v197_v39 }
  0xe0   : > { %v227_v42 = vpop.permute.xlu1 %226  ;;  %v223_v43 = vpop.permute.xlu0 %222 }
  0xe1   : > { %v234_v44 = vadd.f32 %v227_v42, %v219_v40  ;;  %v233_v45 = vadd.f32 %v223_v43, %v218_v41 }
  0xe3   : > { %1414 = vtanh.f32 %v234_v44 }
  0xe4   : > { %1416 = vtanh.f32 %v233_v45 }
  0xe5   : > { %v190_v46 = vpop.permute.xlu1 %189  ;;  %v209_v47 = vpop.permute.xlu0 %208 }
  0xe6   : > { %v198_v48 = vmul.f32 %v195_v33, %v190_v46  ;;  %v217_v49 = vmul.f32 %v214_v31, %v209_v47 }
  0xe8   : > { %v220_v50 = vadd.f32 %v217_v49, %v198_v48 }
  0xea   : > { %v231_v51 = vpop.permute.xlu1 %230  ;;  %v251_v63 = vpop.permute.xlu0 %250 }
  0xeb   : > { %v235_v52 = vadd.f32 %v231_v51, %v220_v50 }
  0xed   : > { %v1415_v53 = vpop.eup %1414  ;;  %1418 = vtanh.f32 %v235_v52 }
  0xee   : > { %v1417_v54 = vpop.eup %1416  ;;  %v246_v57 = vpop.permute.xlu1 %245 }
  0xef   : > { %v1294_v55 = vpack.c.bf16 %v1415_v53, %v1417_v54  ;;  %v364_v34 = vpop.permute.xlu0 %363 }
  0xf1   : > { %1295 = vmatpush3.bf16.msra.mxu0 %v1294_v55  ;;  %1314 = vmatpush3.bf16.msra.mxu1 %v1294_v55 }
  0xf2   : > { %1213 = vmatprep.subr.mxu0 %v1595_v11  ;;  %1313 = vmatprep.subr.mxu1 %v1595_v11 }
  0xf3   : > { %v470_v45 = vpop.permute.xlu0 %469 }
  0xf7   : > { %v1419_v56 = vpop.eup %1418 }
  0xf8   : > { %1214 = vmatpush3.msk.msra.mxu0 %vm265_vm1, %v1419_v56  ;;  %1315 = vmatpush3.msk.msra.mxu1 %vm265_vm1, %v1419_v56 }
  0xf9   : > { %1216 = vmatmul.mubr.msk.f32.vlgmr.msra.gmra.mrb[0].mxu0 %vm258_vm2, %v1778_v6  ;;  %1222 = vmatmul.mubr.msk.f32.vlgmr.msra.gmra.mrb[0].mxu1 %vm258_vm2, %v1782_v8  ;;  %v256_v6 = vpop.permute.xlu1 %255 }
  0xfa   : > { %1218 = vmatprep.mubr.msk.f32.mxu0 %vm1594_vm0, %v1595_v11  ;;  %1296 = vmatprep.subr.bf16.mxu1 %v1593_v7 }
  0xfb   : > { %1230 = vmatprep.mubr.msk.f32.mxu1 %vm1594_vm0, %v1595_v11  ;;  %1299 = vmatprep.subr.bf16.mxu0 %v1593_v7 }
  0xfd   : > { %1219 = vmatmul.mubr.msk.f32.gmra.mrb[2].mxu0 %vm258_vm2, %v1795_v12  ;;  %v359_v32 = vpop.permute.xlu1 %358 }
  0xfe   : > { %1245 = vmatprep.mubr.msk.f32.mxu0 %vm1594_vm0, %v1595_v11 }
 0x1cc   : > { %v335_v58 = vpop.f32.mrb[0].mxu0  ;;  %v345_v59 = vpop.f32.mrb[0].mxu1 }
 0x1cd   : > { %v1217_v60 = vpop.f32.mrb[1].mxu0  ;;  %v1223_v61 = vpop.f32.mrb[1].mxu1  ;;  %v336_v62 = vadd.f32 %v335_v58, %v246_v57  ;;  %v346_v8 = vadd.f32 %v345_v59, %v256_v6 }
 0x1cf   : > { %1420 = vtanh.f32 %v336_v62 }
 0x1d0   : > { %v340_v2 = vpop.f32.mrb[2].mxu0 }
 0x1d1   : > { %v341_v3 = vadd.f32 %v340_v2, %v251_v63  ;;  %v1220_v5 = vpop.f32.mrb[3].mxu0 }
 0x1d3   : > { %1422 = vtanh.f32 %v341_v3 }
 0x1d4   : > { %1424 = vtanh.f32 %v346_v8  ;;  %v894_v8 = vld [vmem:[#allocation2 + $0xe0] sm:$0x1f] }
 0x1d5   : > { %897 = vperm.xlu1 %1397, %v894_v8   ;;  %906 = vperm.xlu0 %1398, %v894_v8  }
 0x1d9   : > { %v1421_v25 = vpop.eup %1420 }
 0x1dd   : > { %v1423_v12 = vpop.eup %1422 }
 0x1de   : > { %v1297_v29 = vpack.c.bf16 %v1423_v12, %v1421_v25  ;;  %v1425_v30 = vpop.eup %1424  ;;  %v1596_v25 = vmov 2   ;;  %v1597_v12 = vmov 4  }
 0x1df   : > { %1399 = vset.pattern.permute.xlu1 %v1596_v25  ;;  %1401 = vset.pattern.permute.xlu0 %v1597_v12 }
 0x1e0   : > { %1298 = vmatpush3.bf16.msra.mxu1 %v1297_v29  ;;  %916 = vperm.xlu1 %1399, %v894_v8   ;;  %v1599_v29 = vmov 7  }
 0x1e1   : > { %1228 = vmatprep.subr.mxu1 %v1595_v11  ;;  %936 = vperm.xlu0 %1401, %v894_v8  }
 0x1e4   : > { %1229 = vmatpush3.msk.msra.mxu1 %vm265_vm1, %v1425_v30  ;;  %v1602_v30 = vmov 8  }
 0x1e5   : > { %1231 = vmatmul.mubr.msk.f32.vlgmr.msra.gmra.mrb[2].mxu1 %vm258_vm2, %v1786_v9  ;;  %1302 = vmatprep.subr.bf16.mxu1 %v1593_v7 }
 0x1e6   : > { %1233 = vmatprep.mubr.msk.f32.mxu1 %vm1594_vm0, %v1595_v11  ;;  %1404 = vset.pattern.permute.xlu0 %v1599_v29 }
 0x1e7   : > { %966 = vperm.xlu0 %1404, %v894_v8  }
 0x1e9   : > { %1234 = vmatmul.mubr.msk.f32.gmra.mrb[4].mxu1 %vm258_vm2, %v1813_v18  ;;  %v369_v18 = vpop.permute.xlu1 %368 }
 0x1ea   : > { %1236 = vmatprep.mubr.msk.f32.mxu1 %vm1594_vm0, %v1595_v11 }
 0x1eb   : > { %1407 = vset.pattern.permute.xlu0 %v1592_v4 }
 0x1ec   : > { %996 = vperm.xlu0 %1407, %v894_v8  }
 0x1ed   : > { %1237 = vmatmul.mubr.msk.f32.gmra.mrb[6].mxu1 %vm258_vm2, %v1789_v10 }
 0x1ee   : > { %1260 = vmatprep.mubr.msk.f32.mxu1 %vm1594_vm0, %v1595_v11 }
 0x1f0   : > { %1410 = vset.pattern.permute.xlu0 %v1596_v25 }
 0x2b8   : > { %v446_v31 = vpop.f32.mrb[2].mxu1 }
 0x2b9   : > { %v1232_v9 = vpop.f32.mrb[3].mxu1  ;;  %v447_v33 = vadd.f32 %v446_v31, %v359_v32  ;;  %v1603_v31 = vmov 9  }
 0x2bb   : > { %1426 = vtanh.f32 %v447_v33 }
 0x2bc   : > { %v451_v35 = vpop.f32.mrb[4].mxu1 }
 0x2bd   : > { %v452_v36 = vadd.f32 %v451_v35, %v364_v34  ;;  %v1235_v37 = vpop.f32.mrb[5].mxu1 }
 0x2bf   : > { %1428 = vtanh.f32 %v452_v36 }
 0x2c0   : > { %v456_v38 = vpop.f32.mrb[6].mxu1 }
 0x2c1   : > { %v457_v39 = vadd.f32 %v456_v38, %v369_v18  ;;  %v1238_v40 = vpop.f32.mrb[7].mxu1 }
 0x2c3   : > { %1430 = vtanh.f32 %v457_v39 }
 0x2c5   : > { %v1427_v41 = vpop.eup %1426 }
 0x2c9   : > { %v1429_v10 = vpop.eup %1428 }
 0x2ca   : > { %v1300_v42 = vpack.c.bf16 %v1429_v10, %v1427_v41 }
 0x2cc   : > { %1301 = vmatpush3.bf16.msra.mxu0 %v1300_v42 }
 0x2cd   : > { %1243 = vmatprep.subr.mxu0 %v1595_v11  ;;  %v1431_v43 = vpop.eup %1430 }
 0x2d0   : > { %1244 = vmatpush3.msk.msra.mxu0 %vm265_vm1, %v1431_v43 }
 0x2d1   : > { %1246 = vmatmul.mubr.msk.f32.vlgmr.msra.gmra.mrb[4].mxu0 %vm258_vm2, %v1817_v19  ;;  %1305 = vmatprep.subr.bf16.mxu0 %v1593_v7  ;;  %v475_v7 = vpop.permute.xlu1 %474 }
 0x2d2   : > { %1248 = vmatprep.mubr.msk.f32.mxu0 %vm1594_vm0, %v1595_v11 }
 0x2d5   : > { %1249 = vmatmul.mubr.msk.f32.gmra.mrb[6].mxu0 %vm258_vm2, %v1799_v13  ;;  %v480_v13 = vpop.permute.xlu0 %479  ;;  %v581_v57 = vpop.permute.xlu1 %580 }
 0x2d6   : > { %1251 = vmatprep.mubr.msk.f32.mxu0 %vm1594_vm0, %v1595_v11 }
 0x2d9   : > { %1252 = vmatmul.mubr.msk.f32.gmra.mrb[8].mxu0 %vm258_vm2, %v1821_v20 }
 0x2da   : > { %1275 = vmatprep.mubr.msk.f32.mxu0 %vm1594_vm0, %v1595_v11 }
 0x3a4   : > { %v557_v44 = vpop.f32.mrb[4].mxu0 }
 0x3a5   : > { %v1247_v19 = vpop.f32.mrb[5].mxu0  ;;  %v558_v46 = vadd.f32 %v557_v44, %v470_v45 }
 0x3a7   : > { %1432 = vtanh.f32 %v558_v46 }
 0x3a8   : > { %v562_v47 = vpop.f32.mrb[6].mxu0 }
 0x3a9   : > { %v563_v48 = vadd.f32 %v562_v47, %v475_v7  ;;  %v1250_v49 = vpop.f32.mrb[7].mxu0 }
 0x3ab   : > { %1434 = vtanh.f32 %v563_v48 }
 0x3ac   : > { %v567_v50 = vpop.f32.mrb[8].mxu0 }
 0x3ad   : > { %v568_v51 = vadd.f32 %v567_v50, %v480_v13  ;;  %v1253_v52 = vpop.f32.mrb[9].mxu0  ;;  %v921_v13 = vsub.s32 2, %v1837_v26  ;;  %v931_v50 = vsub.s32 3, %v1837_v26 }
 0x3af   : > { %1436 = vtanh.f32 %v568_v51 }
 0x3b1   : > { %v1433_v53 = vpop.eup %1432 }
 0x3b5   : > { %v1435_v20 = vpop.eup %1434 }
 0x3b6   : > { %v1303_v54 = vpack.c.bf16 %v1435_v20, %v1433_v53  ;;  %v941_v20 = vsub.s32 4, %v1837_v26 }
 0x3b8   : > { %1304 = vmatpush3.bf16.msra.mxu1 %v1303_v54 }
 0x3b9   : > { %1258 = vmatprep.subr.mxu1 %v1595_v11  ;;  %v1437_v55 = vpop.eup %1436 }
 0x3bc   : > { %1259 = vmatpush3.msk.msra.mxu1 %vm265_vm1, %v1437_v55  ;;  %v951_v55 = vsub.s32 5, %v1837_v26 }
 0x3bd   : > { %1261 = vmatmul.mubr.msk.f32.vlgmr.msra.gmra.mrb[8].mxu1 %vm258_vm2, %v1802_v14  ;;  %v586_v14 = vpop.permute.xlu0 %585 }
 0x3be   : > { %1263 = vmatprep.mubr.msk.f32.mxu1 %vm1594_vm0, %v1595_v11 }
 0x3c1   : > { %1264 = vmatmul.mubr.msk.f32.gmra.mrb[10].mxu1 %vm258_vm2, %v1824_v21  ;;  %v591_v21 = vpop.permute.xlu1 %590  ;;  %v692_v9 = vpop.permute.xlu0 %691 }
 0x3c2   : > { %1266 = vmatprep.mubr.msk.f32.mxu1 %vm1594_vm0, %v1595_v11 }
 0x3c5   : > { %1267 = vmatmul.mubr.msk.f32.gmra.mrb[12].mxu1 %vm258_vm2, %v1805_v15  ;;  %v702_v18 = vpop.permute.xlu0 %701 }
 0x3c6   : > { %1290 = vmatprep.mubr.msk.f32.mxu1 %vm258_vm2, %v1811_v17 }
 0x3c9   : > { %v807_v47 = vpop.permute.xlu0 %806 }
 0x3cd   : > { %v907_v52 = vpop.permute.xlu0 %906 }
 0x490   : > { %v668_v56 = vpop.f32.mrb[8].mxu1 }
 0x491   : > { %v1262_v58 = vpop.f32.mrb[9].mxu1  ;;  %v669_v59 = vadd.f32 %v668_v56, %v581_v57 }
 0x493   : > { %1438 = vtanh.f32 %v669_v59 }
 0x494   : > { %v673_v60 = vpop.f32.mrb[10].mxu1 }
 0x495   : > { %v674_v61 = vadd.f32 %v673_v60, %v586_v14  ;;  %v1265_v62 = vpop.f32.mrb[11].mxu1  ;;  %v961_v14 = vsub.s32 6, %v1837_v26 }
 0x497   : > { %1440 = vtanh.f32 %v674_v61 }
 0x498   : > { %v678_v63 = vpop.f32.mrb[12].mxu1 }
 0x499   : > { %v679_v2 = vadd.f32 %v678_v63, %v591_v21  ;;  %v1268_v3 = vpop.f32.mrb[13].mxu1  ;;  %v937_v21 = vpop.permute.xlu0 %936 }
 0x49b   : > { %1442 = vtanh.f32 %v679_v2 }
 0x49d   : > { %v1439_v5 = vpop.eup %1438 }
 0x4a1   : > { %v1441_v15 = vpop.eup %1440 }
 0x4a2   : > { %v1306_v6 = vpack.c.bf16 %v1441_v15, %v1439_v5  ;;  %v971_v5 = vsub.s32 7, %v1837_v26 }
 0x4a4   : > { %1307 = vmatpush3.bf16.msra.mxu0 %v1306_v6 }
 0x4a5   : > { %1273 = vmatprep.subr.mxu0 %v1595_v11  ;;  %v1443_v17 = vpop.eup %1442 }
 0x4a8   : > { %1274 = vmatpush3.msk.msra.mxu0 %vm265_vm1, %v1443_v17 }
 0x4a9   : > { %1276 = vmatmul.mubr.msk.f32.vlgmr.msra.gmra.mrb[10].mxu0 %vm258_vm2, %v1827_v22  ;;  %v1598_v22 = vmov 3  }
 0x4aa   : > { %1278 = vmatprep.mubr.msk.f32.mxu0 %vm1594_vm0, %v1595_v11  ;;  %1400 = vset.pattern.permute.xlu1 %v1598_v22 }
 0x4ab   : > { %926 = vperm.xlu1 %1400, %v894_v8  }
 0x4ad   : > { %1279 = vmatmul.mubr.msk.f32.gmra.mrb[12].mxu0 %vm258_vm2, %v1808_v16  ;;  %v1600_v16 = vmov 5  }
 0x4ae   : > { %1281 = vmatprep.mubr.msk.f32.mxu0 %vm1594_vm0, %v1595_v11  ;;  %v1601_v11 = vmov 6  }
 0x4af   : > { %1402 = vset.pattern.permute.xlu1 %v1600_v16  ;;  %v967_v16 = vpop.permute.xlu0 %966 }
 0x4b0   : > { %946 = vperm.xlu1 %1402, %v894_v8  }
 0x4b1   : > { %1282 = vmatmul.mubr.msk.f32.gmra.mrb[14].mxu0 %vm258_vm2, %v1830_v23  ;;  %v1002_v23 = vld [vmem:[#allocation2 + $0x100] sm:$0x1] }
 0x4b2   : > { %1019 = vperm.xlu0 %1410, %v1002_v23  }
 0x4b4   : > { %1403 = vset.pattern.permute.xlu1 %v1601_v11 }
 0x4b5   : > { %956 = vperm.xlu1 %1403, %v894_v8  }
 0x4b6   : > { %1413 = vset.pattern.permute.xlu0 %v1592_v4  ;;  %v697_v4 = vpop.permute.xlu1 %696 }
 0x4b7   : > { %1043 = vperm.xlu0 %1413, %v1002_v23  }
 0x4b9   : > { %1405 = vset.pattern.permute.xlu1 %v1602_v30 }
 0x4ba   : > { %976 = vperm.xlu1 %1405, %v894_v8   ;;  %v802_v42 = vpop.permute.xlu1 %801 }
 0x4be   : > { %1406 = vset.pattern.permute.xlu1 %v1603_v31  ;;  %v898_v43 = vpop.permute.xlu1 %897 }
 0x4bf   : > { %986 = vperm.xlu1 %1406, %v894_v8  }
 0x4c2   : > { %v917_v44 = vpop.permute.xlu1 %916 }
 0x4c3   : > { %1408 = vset.pattern.permute.xlu1 %v1591_v1 }
 0x4c4   : > { %1005 = vperm.xlu1 %1408, %v1002_v23  }
 0x4c8   : > { %1409 = vset.pattern.permute.xlu1 %v1590_v0 }
 0x4c9   : > { %1010 = vperm.xlu1 %1409, %v1002_v23  }
 0x4cd   : > { %1411 = vset.pattern.permute.xlu1 %v1598_v22 }
 0x4ce   : > { %1027 = vperm.xlu1 %1411, %v1002_v23  }
 0x4d2   : > { %1412 = vset.pattern.permute.xlu1 %v1597_v12 }
 0x4d3   : > { %1035 = vperm.xlu1 %1412, %v1002_v23  }
 0x52a   : > { %v927_v7 = vpop.permute.xlu1 %926 }
 0x52f   : > { %v947_v49 = vpop.permute.xlu1 %946 }
 0x534   : > { %v957_v59 = vpop.permute.xlu1 %956 }
 0x539   : > { %v977_v25 = vpop.permute.xlu1 %976 }
 0x57c   : > { %v779_v32 = vpop.f32.mrb[10].mxu0 }
 0x57d   : > { %v1277_v33 = vpop.f32.mrb[11].mxu0  ;;  %v780_v34 = vadd.f32 %v779_v32, %v692_v9 }
 0x57e   : > { %v987_v33 = vpop.permute.xlu1 %986 }
 0x57f   : > { %1444 = vtanh.f32 %v780_v34 }
 0x580   : > { %v784_v35 = vpop.f32.mrb[12].mxu0 }
 0x581   : > { %v785_v36 = vadd.f32 %v784_v35, %v697_v4  ;;  %v1280_v37 = vpop.f32.mrb[13].mxu0 }
 0x583   : > { %1446 = vtanh.f32 %v785_v36  ;;  %v997_v36 = vpop.permute.xlu0 %996 }
 0x584   : > { %v789_v1 = vpop.f32.mrb[14].mxu0 }
 0x585   : > { %v790_v38 = vadd.f32 %v789_v1, %v702_v18  ;;  %v1283_v39 = vpop.f32.mrb[15].mxu0  ;;  %v1006_v1 = vpop.permute.xlu1 %1005 }
 0x587   : > { %1448 = vtanh.f32 %v790_v38 }
 0x589   : > { %v1445_v0 = vpop.eup %1444  ;;  %v1011_v38 = vpop.permute.xlu1 %1010 }
 0x58d   : > { %v1447_v40 = vpop.eup %1446 }
 0x58e   : > { %v1308_v41 = vpack.c.bf16 %v1447_v40, %v1445_v0  ;;  %v1028_v0 = vpop.permute.xlu1 %1027  ;;  %v1020_v40 = vpop.permute.xlu0 %1019 }
 0x590   : > { %1309 = vmatprep.subr.bf16.mxu1 %v1308_v41 }
 0x591   : > { %v1449_v10 = vpop.eup %1448  ;;  %1311 = vmatpush3.bf16.msra.mxu1 %v1308_v41 }
 0x592   : > { %1288 = vmatprep.subr.msk.mxu1 %vm265_vm1, %v1449_v10 }
 0x595   : > { %1289 = vmatpush3.msk.msra.mxu1 %vm265_vm1, %v1449_v10 }
 0x596   : > { %1291 = vmatmul.mubr.msk.f32.vlgmr.msra.gmra.mrb[14].mxu1 %vm258_vm2, %v1833_v24 }
 0x669   : > { %v1292_v45 = vpop.f32.mrb[14].mxu1 }
 0x66a   : > { %v882_v19 = vpop.f32.mrb[15].mxu1  ;;  %v888_v48 = vadd.f32 %v1292_v45, %v807_v47 }
 0x66b   : > { %v883_v46 = vadd.f32 %v882_v19, %v802_v42  ;;  %v1036_v19 = vpop.permute.xlu1 %1035 }
 0x66d   : > { %1450 = vtanh.f32 %v883_v46 }
 0x66e   : > { %1452 = vtanh.f32 %v888_v48 }
 0x677   : > { %v1451_v51 = vpop.eup %1450 }
 0x678   : > { %v903_v24 = vrot.slane %v1451_v51, %v1843_v28  ;;  %v912_v53 = vrot.slane %v1451_v51, %v1840_v27  ;;  %v922_v54 = vrot.slane %v1451_v51, %v921_v13  ;;  %v932_v58 = vrot.slane %v1451_v51, %v931_v50  ;;  %v1453_v8 = vpop.eup %1452 }
 0x679   : > { %v942_v62 = vrot.slane %v1451_v51, %v941_v20  ;;  %v952_v63 = vrot.slane %v1451_v51, %v951_v55  ;;  %v962_v15 = vrot.slane %v1451_v51, %v961_v14  ;;  %v972_v29 = vrot.slane %v1451_v51, %v971_v5 }
 0x67a   : > { %v904_v56 = vmul.f32 %v903_v24, %v898_v43  ;;  %v913_v57 = vmul.f32 %v912_v53, %v907_v52  ;;  %v923_v61 = vmul.f32 %v922_v54, %v917_v44  ;;  %v933_v3 = vmul.f32 %v932_v58, %v927_v7 }
 0x67b   : > { %v943_v17 = vmul.f32 %v942_v62, %v937_v21  ;;  %v953_v12 = vmul.f32 %v952_v63, %v947_v49  ;;  %v963_v11 = vmul.f32 %v962_v15, %v957_v59  ;;  %v982_v23 = vrot.slane %v1453_v8, %v1843_v28  ;;  %v1044_v49 = vpop.permute.xlu0 %1043 }
 0x67c   : > { %v914_v60 = vadd.f32 %v913_v57, %v904_v56  ;;  %v992_v31 = vrot.slane %v1453_v8, %v1840_v27  ;;  %v973_v9 = vmul.f32 %v972_v29, %v967_v16 }
 0x67d   : > { %v983_v34 = vmul.f32 %v982_v23, %v977_v25 }
 0x67e   : > { %v924_v2 = vadd.f32 %v923_v61, %v914_v60  ;;  %v993_v4 = vmul.f32 %v992_v31, %v987_v33 }
 0x680   : > { %v934_v6 = vadd.f32 %v933_v3, %v924_v2 }
 0x682   : > { %v944_v22 = vadd.f32 %v943_v17, %v934_v6 }
 0x684   : > { %v954_v30 = vadd.f32 %v953_v12, %v944_v22 }
 0x686   : > { %v964_v32 = vadd.f32 %v963_v11, %v954_v30 }
 0x688   : > { %v974_v26 = vadd.f32 %v973_v9, %v964_v32 }
 0x68a   : > { %v984_v35 = vadd.f32 %v983_v34, %v974_v26 }
 0x68c   : > { %v994_v37 = vadd.f32 %v993_v4, %v984_v35 }
 0x68e   : > { %v999_v18 = vadd.f32 %v997_v36, %v994_v37 }
 0x690   : > { %1454 = vtanh.f32 %v999_v18 }
 0x69a   : > { %v1455_v39 = vpop.eup %1454 }
 0x69b   : > { %v1014_v28 = vrot.slane %v1455_v39, 1  ;;  %v1022_v27 = vrot.slane %v1455_v39, 2  ;;  %v1008_v41 = vmul.f32 %v1455_v39, %v1006_v1  ;;  %v1030_v42 = vrot.slane %v1455_v39, 3 }
 0x69c   : > { %v1038_v44 = vrot.slane %v1455_v39, 4 }
 0x69d   : > { %v1016_v10 = vmul.f32 %v1014_v28, %v1011_v38  ;;  %v1024_v45 = vmul.f32 %v1022_v27, %v1020_v40  ;;  %v1032_v46 = vmul.f32 %v1030_v42, %v1028_v0 }
 0x69e   : > { %v1040_v47 = vmul.f32 %v1038_v44, %v1036_v19 }
 0x69f   : > { %v1017_v43 = vadd.f32 %v1016_v10, %v1008_v41 }
 0x6a1   : > { %v1025_v7 = vadd.f32 %v1024_v45, %v1017_v43 }
 0x6a3   : > { %v1033_v48 = vadd.f32 %v1032_v46, %v1025_v7 }
 0x6a5   : > { %v1041_v13 = vadd.f32 %v1040_v47, %v1033_v48 }
 0x6a7   : > { %v1046_v50 = vadd.f32 %v1044_v49, %v1041_v13 }
 0x6a9   : > { %1047 = vst [vmem:[%s172_s17] sm:$0x1] %v1046_v50 }
 0x6aa   : > { %1527 = shalt.err (!%p1524_p7)
}
 0x6ab   : > { %s1528_s6 = scalar_lea.hbm %s1945_s29, 16  ;;  %s1532_s24 = scalar_lea.hbm %s1991_s2, 32 }
 0x6ac   : > { %p1529_p9 = scmp.ne.s32.totalorder %s1945_s29, %s1528_s6  ;;  %p1533_p0 = scmp.lt.u32.totalorder %s1945_s29, %s1991_s2 }
 0x6ad   : > { %p1534_p1 = scmp.lt.u32.totalorder %s1532_s24, %s1528_s6  ;;  %p1536_p4 = scmp.lt.u32.totalorder %s1528_s6, %s1945_s29 }
 0x6ae   : > { %p1530_p2 = pnand %p1529_p9, %p1711_p12 }
 0x6af   : > { %p1535_p11 = por %p1534_p1, %p1533_p0 }
 0x6b0   : > { %p1531_p5 = pneg %p1530_p2 }
 0x6b1   : > { %p1537_p6 = por %p1536_p4, %p1535_p11 }
 0x6b3   : > { %p1538_p8 = pnand %p1537_p6, %p1531_p5 }
 0x6b5   : > { %1541 = shalt.err (!%p1538_p8)
}
 0x6b6   : > { %1322 = dma.vmem_to_hbm [thread:$0]  (%p1711_p12), %s1947_s27, 16, %s1945_s29, %s1049_s30  }
 0x6b7 PF: > { %s1073_s26 = sand.u32 1, %s1572_s9   ;;  %p2006_p10 = scmp.ne.s32.totalorder %s1996_s16, 0 }
 0x6b8   : > { %p2007_p13 = scmp.ge.s32.totalorder %s1584_s12, 2  ;;  %s1074_s19 = scalar_lea.sflag [#allocation4], %s1073_s26 }
 0x6ba   : > { %p1333_p3 = pnand %p2007_p13, %p2006_p10 }
 0x6bc   : > { %1567 = dma.done.wait (!%p1333_p3), %s1074_s19, 16  }
 0x6bd   : > { %1569 = vsyncadd (!%p1333_p3), %s1074_s19, 4294967280  ;;  %p16_p7 = scmp.ge.s32.totalorder %s1676_s21, 4   ;;  %s2008_s9 = smov %s1576_s10 }
 0x6be   : > { %s2009_s10 = smov %s1580_s11  ;;  %s2010_s11 = smov %s1707_s8 }
 0x6bf   : > { %s2011_s12 = smov %s1676_s21  ;;  %18 = sbr.rel (!%p16_p7) target bundleno = 6 (0x6), region = 86 }
 0x6c6   :  { %1078 = vsyncpa [#allocation3], 1 }
 0x6c7   :  { %1080 = vsyncpa [#allocation3 + $0x1], 1 }
 0x6c8   :  { %1081 = vsyncpa [#allocation6], 1 }
 0x6c9   :  { %1083 = vsyncpa [#allocation6 + $0x1], 1 }
 0x6ca   :  { %1084 = vsyncpa [#allocation4], 1 }
 0x6cb   :  { %1086 = vsyncpa [#allocation4 + $0x1], 1 }

</bundles_post_ra>
